<compile_context>
chip_gen: v5e
topology: v5e:2x2
jax: 0.10.0
libtpu: 0.0.40
codegen_flags: <defaults>
</compile_context>

<pallas_src>
import functools

import jax
import jax.numpy as jnp
from jax import lax
from jax.experimental import pallas as pl
from jax.experimental.pallas import tpu as pltpu


def _round_up(n, m):
    return ((n + m - 1) // m) * m


def _pad_to(a, shape):
    return jnp.pad(a, [(0, t - s) for s, t in zip(a.shape, shape)])


def dlgn_kernel(depth, unroll, ew_dtype, *refs):
    """refs = (x, wg0, bg0, [wg, bg], wv0s, [wv], wl, bl, out)."""
    if depth > 1:
        (x_ref, wg0_ref, bg0_ref, wg_ref, bg_ref,
         wv0s_ref, wv_ref, wl_ref, bl_ref, out_ref) = refs
    else:
        (x_ref, wg0_ref, bg0_ref, wv0s_ref, wl_ref, bl_ref, out_ref) = refs
        wg_ref = bg_ref = wv_ref = None

    mm = wg0_ref.dtype          # bf16 or f32 matmul operand dtype
    f32 = jnp.float32

    def gate_fn(pre):
        # sigmoid(beta * g_orig) == 0.5*(1 + tanh(g)); beta/2 is folded into the
        # gate params and the 0.5 into the value weights -> gate = 1 + tanh(g).
        return (1.0 + jnp.tanh(pre.astype(ew_dtype))).astype(f32)

    x = x_ref[...].astype(mm)

    # Layer 0.
    g = jnp.dot(x, wg0_ref[...], preferred_element_type=f32) + bg0_ref[...]
    # Value path: ones(width) @ W_v0 == precomputed column-sum (0.5 folded in).
    h = gate_fn(g) * wv0s_ref[...]

    # Layers 1..depth-1.
    if depth > 1:
        if unroll:
            for i in range(depth - 1):
                g = jnp.dot(g.astype(mm), wg_ref[i],
                            preferred_element_type=f32) + bg_ref[i]
                h = gate_fn(g) * jnp.dot(h.astype(mm), wv_ref[i],
                                         preferred_element_type=f32)
        else:
            def body(i, carry):
                g, h = carry
                g = jnp.dot(g.astype(mm), wg_ref[i],
                            preferred_element_type=f32) + bg_ref[i]
                h = gate_fn(g) * jnp.dot(h.astype(mm), wv_ref[i],
                                         preferred_element_type=f32)
                return g, h
            g, h = lax.fori_loop(0, depth - 1, body, (g, h))

    # Final layer; sigmoid(z) == 0.5*(1 + tanh(z/2)), the /2 is folded into
    # w_last / b_last at prep time -> a single EUP tanh here.
    h_last = jnp.dot(h.astype(mm), wl_ref[...],
                     preferred_element_type=f32) + bl_ref[...]
    t = jnp.tanh(h_last.astype(ew_dtype)).astype(f32)
    out_ref[...] = (0.5 * (1.0 + t)).astype(out_ref.dtype)


def _vmem_cap_bytes():
    """Per-generation scoped-VMEM cap (conservative vs physical VMEM)."""
    try:
        kind = jax.devices()[0].device_kind.lower()
    except Exception:  # pragma: no cover
        kind = ""
    if "7" in kind:                      # v7x: 64 MiB physical per TensorCore
        return 48 << 20
    if "v5" in kind or "v6" in kind:     # v5e/v6e: 128 MiB physical
        return 100 << 20
    return 48 << 20                      # unknown: stay conservative


def dlgn_forward(x, params, *, beta, depth, use_bf16=True, ew_bf16=False,
                 batch_tile=None, unroll_layers=None):
    batch, dim_in = x.shape
    width = params["w_v"].shape[-1]
    dim_out = params["w_last"].shape[-1]

    mm_dtype = jnp.bfloat16 if use_bf16 else jnp.float32
    ew_dtype = jnp.bfloat16 if ew_bf16 else jnp.float32   # bf16 EUP: v6e/v7x only

    # x's feature dim is only padded to the sublane pack of the matmul dtype
    # (block last dim == full array dim is legal); width/dim_out stay
    # lane-dense multiples of 128.
    sub = 16 if use_bf16 else 8
    DI = _round_up(dim_in, sub)
    W = _round_up(width, 128)
    DO = _round_up(dim_out, 128)

    # Batch tile: multiple of 8 sublanes; default targets >= 2 grid steps so
    # the "parallel" batch axis can split across v7x's two TensorCores.
    if batch_tile is None:
        batch_tile = max(8, min(256, _round_up(pl.cdiv(batch, 2), 8)))
    tb = batch_tile
    B = _round_up(max(batch, tb), tb)

    # Static unroll for small depth; fori_loop bounds vreg live ranges when deep.
    unroll = (depth <= 8) if unroll_layers is None else bool(unroll_layers)

    s = jnp.float32(0.5 * beta)   # ScaledSig constant, folded into gate params

    # Streamed operand: cast to the matmul dtype in the wrapper (halves the
    # per-step DMA bytes when bf16).
    x_p = _pad_to(x, (B, DI)).astype(mm_dtype)

    # Gate layer 0: fold beta/2 into weight and bias.
    w_g0 = _pad_to(params["w_g0"] * s, (DI, W)).astype(mm_dtype)
    b_g0 = _pad_to(params["b_g0"] * s, (1, W)).astype(jnp.float32)
    # Layer-0 value path: ones(width) @ W_v0 == column-sum; 0.5 gate scale folded.
    wv0_sum = _pad_to(0.5 * params["w_v"][0].sum(axis=0, keepdims=True),
                      (1, W)).astype(jnp.float32)
    # Final sigmoid's /2 folded into the last layer (exact power-of-two scale).
    w_l = _pad_to(0.5 * params["w_last"], (W, DO)).astype(mm_dtype)
    b_l = _pad_to(0.5 * params["b_last"], (1, DO)).astype(jnp.float32)

    operands = [x_p, w_g0, b_g0]
    if depth > 1:
        # Gate layers 1..depth-1: weights unchanged (beta/2 on input and output
        # cancels), biases scaled by beta/2; value weights carry the 0.5 fold.
        w_g = _pad_to(params["w_g"], (depth - 1, W, W)).astype(mm_dtype)
        b_g = _pad_to(params["b_g"] * s, (depth - 1, 1, W)).astype(jnp.float32)
        w_v = _pad_to(0.5 * params["w_v"][1:],
                      (depth - 1, W, W)).astype(mm_dtype)
        operands += [w_g, b_g, wv0_sum, w_v, w_l, b_l]
    else:
        operands += [wv0_sum, w_l, b_l]

    def build_in_specs(single_buffer_weights):
        kw = ({"pipeline_mode": pl.Buffered(1)}
              if single_buffer_weights else {})

        def resident(shape):
            idx = (lambda b: (0, 0)) if len(shape) == 2 else (lambda b: (0, 0, 0))
            return pl.BlockSpec(shape, idx, **kw)

        specs = [pl.BlockSpec((tb, DI), lambda b: (b, 0))]   # x: streamed
        specs += [resident(a.shape) for a in operands[1:]]   # weights: resident
        return specs

    def vmem_limit(single_buffer_weights):
        resident = sum(int(a.size) * a.dtype.itemsize for a in operands[1:])
        resident *= 1 if single_buffer_weights else 2
        stream = 2 * (tb * DI * x_p.dtype.itemsize + tb * DO * 4)
        needed = resident + stream + (4 << 20)               # internal slack
        return int(min(_vmem_cap_bytes(), max(32 << 20, needed)))

    flops = int(2 * B * (DI * W + 2 * max(depth - 1, 0) * W * W + W * DO)
                + 3 * B * W * depth + 3 * B * DO)
    transcendentals = int(B * W * depth + B * DO)
    bytes_accessed = int(sum(int(a.size) * a.dtype.itemsize for a in operands)
                         + B * DO * 4)

    kernel = functools.partial(dlgn_kernel, int(depth), bool(unroll), ew_dtype)

    def call(single_buffer_weights):
        return pl.pallas_call(
            kernel,
            out_shape=jax.ShapeDtypeStruct((B, DO), jnp.float32),
            grid=(B // tb,),
            in_specs=build_in_specs(single_buffer_weights),
            out_specs=pl.BlockSpec((tb, DO), lambda b: (b, 0)),
            compiler_params=pltpu.CompilerParams(
                dimension_semantics=("parallel",),   # v7x: tiles over 2 TCs
                vmem_limit_bytes=vmem_limit(single_buffer_weights),
            ),
            cost_estimate=pl.CostEstimate(
                flops=flops,
                transcendentals=transcendentals,
                bytes_accessed=bytes_accessed,
            ),
        )(*operands)

    try:
        out_padded = call(True)
    except Exception:
        # Fallback for jax versions without BlockSpec(pipeline_mode=...).
        out_padded = call(False)

    return out_padded[:batch, :dim_out]


def init_params(key, dim_in, width, depth, dim_out):
    """Deterministic synthetic parameters (PyTorch-like uniform fan-in init)."""
    ks = jax.random.split(key, 8)

    def unif(k, shape, fan_in):
        bound = 1.0 / jnp.sqrt(jnp.float32(fan_in))
        return jax.random.uniform(k, shape, jnp.float32, -bound, bound)

    return {
        "w_g0": unif(ks[0], (dim_in, width), dim_in),
        "b_g0": unif(ks[1], (1, width), dim_in),
        "w_g": unif(ks[2], (depth - 1, width, width), width),
        "b_g": unif(ks[3], (depth - 1, 1, width), width),
        "w_v": unif(ks[4], (depth, width, width), width),   # bias_vn=False
        "w_last": unif(ks[5], (width, dim_out), width),
        "b_last": unif(ks[6], (1, dim_out), width),
    }


def dlgn_reference(x, params, *, beta, depth):
    """Pure-JAX reference mirroring the PyTorch forward exactly."""
    width = params["w_v"].shape[-1]
    g = x.astype(jnp.float32)
    h = jnp.ones((width,), jnp.float32)
    for i in range(depth):
        if i == 0:
            g = g @ params["w_g0"] + params["b_g0"][0]
        else:
            g = g @ params["w_g"][i - 1] + params["b_g"][i - 1, 0]
        h = jax.nn.sigmoid(beta * g) * (h @ params["w_v"][i])
    h_last = h @ params["w_last"] + params["b_last"][0]
    return jax.nn.sigmoid(h_last)


if __name__ == "__main__":
    batch, dim_in, width, depth, dim_out = 8, 16, 32, 3, 1
    beta = 4.0

    key = jax.random.PRNGKey(0)
    kx, kp = jax.random.split(key)
    x = jax.random.normal(kx, (batch, dim_in), jnp.float32)
    params = init_params(kp, dim_in, width, depth, dim_out)

    ref = dlgn_reference(x, params, beta=beta, depth=depth)

    # f32 path (statically unrolled layers): tight check against the reference.
    out_f32 = jax.block_until_ready(
        dlgn_forward(x, params, beta=beta, depth=depth, use_bf16=False))
    assert out_f32.shape == (batch, dim_out)
    assert jnp.allclose(out_f32, ref, atol=1e-4, rtol=1e-4), "f32 mismatch"

    # f32 path with the lax.fori_loop layer loop (deep-config code path).
    out_fori = jax.block_until_ready(
        dlgn_forward(x, params, beta=beta, depth=depth, use_bf16=False,
                     unroll_layers=False))
    assert jnp.allclose(out_fori, ref, atol=1e-4, rtol=1e-4), "fori mismatch"

    # bf16 path: bf16 matmul operands/streamed x, f32 accumulation + f32
    # elementwise (ew_bf16 left off so the check also holds on v5e).
    out_bf16 = jax.block_until_ready(
        dlgn_forward(x, params, beta=beta, depth=depth, use_bf16=True))
    assert out_bf16.shape == (batch, dim_out)
    assert jnp.allclose(out_bf16, ref, atol=2e-2, rtol=2e-2), "bf16 mismatch"

    print("KERNEL_OK")
</pallas_src>

<mosaic_0001>
module attributes {stable_mosaic.version = 11 : i64} {
  func.func @dlgn_kernel(%arg0: i32, %arg1: memref<8x16xf32, #tpu.memory_space<vmem>>, %arg2: memref<16x128xf32, #tpu.memory_space<vmem>>, %arg3: memref<1x128xf32, #tpu.memory_space<vmem>>, %arg4: memref<2x128x128xf32, #tpu.memory_space<vmem>>, %arg5: memref<2x1x128xf32, #tpu.memory_space<vmem>>, %arg6: memref<1x128xf32, #tpu.memory_space<vmem>>, %arg7: memref<2x128x128xf32, #tpu.memory_space<vmem>>, %arg8: memref<128x128xf32, #tpu.memory_space<vmem>>, %arg9: memref<1x128xf32, #tpu.memory_space<vmem>>, %arg10: memref<8x128xf32, #tpu.memory_space<vmem>>) attributes {dimension_semantics = [#tpu.dimension_semantics<parallel>], iteration_bounds = array<i64: 1>, scalar_prefetch = 0 : i64, scratch_operands = 0 : i64, tpu.core_type = #tpu.core_type<tc>, window_params = [{transform_indices = @transform_0, window_bounds = array<i64: 8, 16>}, {pipeline_mode = #tpu.pipeline_mode<synchronous>, transform_indices = @transform_1, window_bounds = array<i64: 16, 128>}, {pipeline_mode = #tpu.pipeline_mode<synchronous>, transform_indices = @transform_2, window_bounds = array<i64: 1, 128>}, {pipeline_mode = #tpu.pipeline_mode<synchronous>, transform_indices = @transform_3, window_bounds = array<i64: 2, 128, 128>}, {pipeline_mode = #tpu.pipeline_mode<synchronous>, transform_indices = @transform_4, window_bounds = array<i64: 2, 1, 128>}, {pipeline_mode = #tpu.pipeline_mode<synchronous>, transform_indices = @transform_5, window_bounds = array<i64: 1, 128>}, {pipeline_mode = #tpu.pipeline_mode<synchronous>, transform_indices = @transform_6, window_bounds = array<i64: 2, 128, 128>}, {pipeline_mode = #tpu.pipeline_mode<synchronous>, transform_indices = @transform_7, window_bounds = array<i64: 128, 128>}, {pipeline_mode = #tpu.pipeline_mode<synchronous>, transform_indices = @transform_8, window_bounds = array<i64: 1, 128>}, {transform_indices = @transform_9, window_bounds = array<i64: 8, 128>}]} {
    %c0 = arith.constant 0 : index
    %c0_0 = arith.constant 0 : index
    %0 = vector.load %arg1[%c0, %c0_0] : memref<8x16xf32, #tpu.memory_space<vmem>>, vector<8x16xf32>
    %c0_1 = arith.constant 0 : index
    %c0_2 = arith.constant 0 : index
    %1 = vector.load %arg2[%c0_1, %c0_2] : memref<16x128xf32, #tpu.memory_space<vmem>>, vector<16x128xf32>
    %cst = arith.constant dense<0.000000e+00> : vector<8x128xf32>
    %2 = tpu.matmul %0, %1, %cst {dimension_numbers = #tpu.dot_dimension_numbers<[1], [0], [0], [1], [0, 0, 1, 1], [], []>} : vector<8x16xf32>, vector<16x128xf32>, vector<8x128xf32> -> vector<8x128xf32>
    %c0_3 = arith.constant 0 : index
    %c0_4 = arith.constant 0 : index
    %3 = vector.load %arg3[%c0_3, %c0_4] : memref<1x128xf32, #tpu.memory_space<vmem>>, vector<1x128xf32>
    %4 = vector.broadcast %3 : vector<1x128xf32> to vector<8x128xf32>
    %5 = arith.addf %2, %4 : vector<8x128xf32>
    %6 = math.tanh %5 : vector<8x128xf32>
    %cst_5 = arith.constant 1.000000e+00 : f32
    %7 = vector.broadcast %cst_5 : f32 to vector<8x128xf32>
    %8 = arith.addf %7, %6 : vector<8x128xf32>
    %c0_6 = arith.constant 0 : index
    %c0_7 = arith.constant 0 : index
    %9 = vector.load %arg6[%c0_6, %c0_7] : memref<1x128xf32, #tpu.memory_space<vmem>>, vector<1x128xf32>
    %10 = vector.broadcast %9 : vector<1x128xf32> to vector<8x128xf32>
    %11 = arith.mulf %8, %10 : vector<8x128xf32>
    %c0_8 = arith.constant 0 : index
    %c0_9 = arith.constant 0 : index
    %c0_10 = arith.constant 0 : index
    %12 = vector.load %arg4[%c0_8, %c0_9, %c0_10] : memref<2x128x128xf32, #tpu.memory_space<vmem>>, vector<1x128x128xf32>
    %13 = vector.shape_cast %12 : vector<1x128x128xf32> to vector<128x128xf32>
    %cst_11 = arith.constant dense<0.000000e+00> : vector<8x128xf32>
    %14 = tpu.matmul %5, %13, %cst_11 {dimension_numbers = #tpu.dot_dimension_numbers<[1], [0], [0], [1], [0, 0, 1, 1], [], []>} : vector<8x128xf32>, vector<128x128xf32>, vector<8x128xf32> -> vector<8x128xf32>
    %c0_12 = arith.constant 0 : index
    %c0_13 = arith.constant 0 : index
    %c0_14 = arith.constant 0 : index
    %15 = vector.load %arg5[%c0_12, %c0_13, %c0_14] : memref<2x1x128xf32, #tpu.memory_space<vmem>>, vector<1x1x128xf32>
    %16 = vector.shape_cast %15 : vector<1x1x128xf32> to vector<1x128xf32>
    %17 = vector.broadcast %16 : vector<1x128xf32> to vector<8x128xf32>
    %18 = arith.addf %14, %17 : vector<8x128xf32>
    %19 = math.tanh %18 : vector<8x128xf32>
    %cst_15 = arith.constant 1.000000e+00 : f32
    %20 = vector.broadcast %cst_15 : f32 to vector<8x128xf32>
    %21 = arith.addf %20, %19 : vector<8x128xf32>
    %c0_16 = arith.constant 0 : index
    %c0_17 = arith.constant 0 : index
    %c0_18 = arith.constant 0 : index
    %22 = vector.load %arg7[%c0_16, %c0_17, %c0_18] : memref<2x128x128xf32, #tpu.memory_space<vmem>>, vector<1x128x128xf32>
    %23 = vector.shape_cast %22 : vector<1x128x128xf32> to vector<128x128xf32>
    %cst_19 = arith.constant dense<0.000000e+00> : vector<8x128xf32>
    %24 = tpu.matmul %11, %23, %cst_19 {dimension_numbers = #tpu.dot_dimension_numbers<[1], [0], [0], [1], [0, 0, 1, 1], [], []>} : vector<8x128xf32>, vector<128x128xf32>, vector<8x128xf32> -> vector<8x128xf32>
    %25 = arith.mulf %21, %24 : vector<8x128xf32>
    %c1 = arith.constant 1 : index
    %c0_20 = arith.constant 0 : index
    %c0_21 = arith.constant 0 : index
    %26 = vector.load %arg4[%c1, %c0_20, %c0_21] : memref<2x128x128xf32, #tpu.memory_space<vmem>>, vector<1x128x128xf32>
    %27 = vector.shape_cast %26 : vector<1x128x128xf32> to vector<128x128xf32>
    %cst_22 = arith.constant dense<0.000000e+00> : vector<8x128xf32>
    %28 = tpu.matmul %18, %27, %cst_22 {dimension_numbers = #tpu.dot_dimension_numbers<[1], [0], [0], [1], [0, 0, 1, 1], [], []>} : vector<8x128xf32>, vector<128x128xf32>, vector<8x128xf32> -> vector<8x128xf32>
    %c1_23 = arith.constant 1 : index
    %c0_24 = arith.constant 0 : index
    %c0_25 = arith.constant 0 : index
    %29 = vector.load %arg5[%c1_23, %c0_24, %c0_25] : memref<2x1x128xf32, #tpu.memory_space<vmem>>, vector<1x1x128xf32>
    %30 = vector.shape_cast %29 : vector<1x1x128xf32> to vector<1x128xf32>
    %31 = vector.broadcast %30 : vector<1x128xf32> to vector<8x128xf32>
    %32 = arith.addf %28, %31 : vector<8x128xf32>
    %33 = math.tanh %32 : vector<8x128xf32>
    %cst_26 = arith.constant 1.000000e+00 : f32
    %34 = vector.broadcast %cst_26 : f32 to vector<8x128xf32>
    %35 = arith.addf %34, %33 : vector<8x128xf32>
    %c1_27 = arith.constant 1 : index
    %c0_28 = arith.constant 0 : index
    %c0_29 = arith.constant 0 : index
    %36 = vector.load %arg7[%c1_27, %c0_28, %c0_29] : memref<2x128x128xf32, #tpu.memory_space<vmem>>, vector<1x128x128xf32>
    %37 = vector.shape_cast %36 : vector<1x128x128xf32> to vector<128x128xf32>
    %cst_30 = arith.constant dense<0.000000e+00> : vector<8x128xf32>
    %38 = tpu.matmul %25, %37, %cst_30 {dimension_numbers = #tpu.dot_dimension_numbers<[1], [0], [0], [1], [0, 0, 1, 1], [], []>} : vector<8x128xf32>, vector<128x128xf32>, vector<8x128xf32> -> vector<8x128xf32>
    %39 = arith.mulf %35, %38 : vector<8x128xf32>
    %c0_31 = arith.constant 0 : index
    %c0_32 = arith.constant 0 : index
    %40 = vector.load %arg8[%c0_31, %c0_32] : memref<128x128xf32, #tpu.memory_space<vmem>>, vector<128x128xf32>
    %cst_33 = arith.constant dense<0.000000e+00> : vector<8x128xf32>
    %41 = tpu.matmul %39, %40, %cst_33 {dimension_numbers = #tpu.dot_dimension_numbers<[1], [0], [0], [1], [0, 0, 1, 1], [], []>} : vector<8x128xf32>, vector<128x128xf32>, vector<8x128xf32> -> vector<8x128xf32>
    %c0_34 = arith.constant 0 : index
    %c0_35 = arith.constant 0 : index
    %42 = vector.load %arg9[%c0_34, %c0_35] : memref<1x128xf32, #tpu.memory_space<vmem>>, vector<1x128xf32>
    %43 = vector.broadcast %42 : vector<1x128xf32> to vector<8x128xf32>
    %44 = arith.addf %41, %43 : vector<8x128xf32>
    %45 = math.tanh %44 : vector<8x128xf32>
    %cst_36 = arith.constant 1.000000e+00 : f32
    %46 = vector.broadcast %cst_36 : f32 to vector<8x128xf32>
    %47 = arith.addf %46, %45 : vector<8x128xf32>
    %cst_37 = arith.constant 5.000000e-01 : f32
    %48 = vector.broadcast %cst_37 : f32 to vector<8x128xf32>
    %49 = arith.mulf %48, %47 : vector<8x128xf32>
    %c0_38 = arith.constant 0 : index
    %c0_39 = arith.constant 0 : index
    %50 = vector.load %arg10[%c0_38, %c0_39] : memref<8x128xf32, #tpu.memory_space<vmem>>, vector<8x128xf32>
    tpu.vector_store %arg10[%c0_38, %c0_39], %49 {strides = array<i32>} : memref<8x128xf32, #tpu.memory_space<vmem>>, vector<8x128xf32>,
    return
  }
  func.func @transform_0(%arg0: i32) -> (i32, i32) {
    %c0_i32 = arith.constant 0 : i32
    %c0_i32_0 = arith.constant 0 : i32
    return %arg0, %c0_i32 : i32, i32
  }
  func.func @transform_1(%arg0: i32) -> (i32, i32) {
    %c0_i32 = arith.constant 0 : i32
    %c0_i32_0 = arith.constant 0 : i32
    %c0_i32_1 = arith.constant 0 : i32
    return %c0_i32, %c0_i32_0 : i32, i32
  }
  func.func @transform_2(%arg0: i32) -> (i32, i32) {
    %c0_i32 = arith.constant 0 : i32
    %c0_i32_0 = arith.constant 0 : i32
    %c0_i32_1 = arith.constant 0 : i32
    return %c0_i32, %c0_i32_0 : i32, i32
  }
  func.func @transform_3(%arg0: i32) -> (i32, i32, i32) {
    %c0_i32 = arith.constant 0 : i32
    %c0_i32_0 = arith.constant 0 : i32
    %c0_i32_1 = arith.constant 0 : i32
    %c0_i32_2 = arith.constant 0 : i32
    return %c0_i32, %c0_i32_0, %c0_i32_1 : i32, i32, i32
  }
  func.func @transform_4(%arg0: i32) -> (i32, i32, i32) {
    %c0_i32 = arith.constant 0 : i32
    %c0_i32_0 = arith.constant 0 : i32
    %c0_i32_1 = arith.constant 0 : i32
    %c0_i32_2 = arith.constant 0 : i32
    return %c0_i32, %c0_i32_0, %c0_i32_1 : i32, i32, i32
  }
  func.func @transform_5(%arg0: i32) -> (i32, i32) {
    %c0_i32 = arith.constant 0 : i32
    %c0_i32_0 = arith.constant 0 : i32
    %c0_i32_1 = arith.constant 0 : i32
    return %c0_i32, %c0_i32_0 : i32, i32
  }
  func.func @transform_6(%arg0: i32) -> (i32, i32, i32) {
    %c0_i32 = arith.constant 0 : i32
    %c0_i32_0 = arith.constant 0 : i32
    %c0_i32_1 = arith.constant 0 : i32
    %c0_i32_2 = arith.constant 0 : i32
    return %c0_i32, %c0_i32_0, %c0_i32_1 : i32, i32, i32
  }
  func.func @transform_7(%arg0: i32) -> (i32, i32) {
    %c0_i32 = arith.constant 0 : i32
    %c0_i32_0 = arith.constant 0 : i32
    %c0_i32_1 = arith.constant 0 : i32
    return %c0_i32, %c0_i32_0 : i32, i32
  }
  func.func @transform_8(%arg0: i32) -> (i32, i32) {
    %c0_i32 = arith.constant 0 : i32
    %c0_i32_0 = arith.constant 0 : i32
    %c0_i32_1 = arith.constant 0 : i32
    return %c0_i32, %c0_i32_0 : i32, i32
  }
  func.func @transform_9(%arg0: i32) -> (i32, i32) {
    %c0_i32 = arith.constant 0 : i32
    %c0_i32_0 = arith.constant 0 : i32
    return %arg0, %c0_i32 : i32, i32
  }
}

module attributes {stable_mosaic.version = 11 : i64} {
  func.func @dlgn_kernel(%arg0: i32, %arg1: memref<8x16xf32, #tpu.memory_space<vmem>>, %arg2: memref<16x128xf32, #tpu.memory_space<vmem>>, %arg3: memref<1x128xf32, #tpu.memory_space<vmem>>, %arg4: memref<2x128x128xf32, #tpu.memory_space<vmem>>, %arg5: memref<2x1x128xf32, #tpu.memory_space<vmem>>, %arg6: memref<1x128xf32, #tpu.memory_space<vmem>>, %arg7: memref<2x128x128xf32, #tpu.memory_space<vmem>>, %arg8: memref<128x128xf32, #tpu.memory_space<vmem>>, %arg9: memref<1x128xf32, #tpu.memory_space<vmem>>, %arg10: memref<8x128xf32, #tpu.memory_space<vmem>>) attributes {dimension_semantics = [#tpu.dimension_semantics<parallel>], iteration_bounds = array<i64: 1>, scalar_prefetch = 0 : i64, scratch_operands = 0 : i64, tpu.core_type = #tpu.core_type<tc>, window_params = [{transform_indices = @transform_0, window_bounds = array<i64: 8, 16>}, {pipeline_mode = #tpu.pipeline_mode<synchronous>, transform_indices = @transform_1, window_bounds = array<i64: 16, 128>}, {pipeline_mode = #tpu.pipeline_mode<synchronous>, transform_indices = @transform_2, window_bounds = array<i64: 1, 128>}, {pipeline_mode = #tpu.pipeline_mode<synchronous>, transform_indices = @transform_3, window_bounds = array<i64: 2, 128, 128>}, {pipeline_mode = #tpu.pipeline_mode<synchronous>, transform_indices = @transform_4, window_bounds = array<i64: 2, 1, 128>}, {pipeline_mode = #tpu.pipeline_mode<synchronous>, transform_indices = @transform_5, window_bounds = array<i64: 1, 128>}, {pipeline_mode = #tpu.pipeline_mode<synchronous>, transform_indices = @transform_6, window_bounds = array<i64: 2, 128, 128>}, {pipeline_mode = #tpu.pipeline_mode<synchronous>, transform_indices = @transform_7, window_bounds = array<i64: 128, 128>}, {pipeline_mode = #tpu.pipeline_mode<synchronous>, transform_indices = @transform_8, window_bounds = array<i64: 1, 128>}, {transform_indices = @transform_9, window_bounds = array<i64: 8, 128>}]} {
    %c0 = arith.constant 0 : index
    %c0_0 = arith.constant 0 : index
    %0 = vector.load %arg1[%c0, %c0_0] : memref<8x16xf32, #tpu.memory_space<vmem>>, vector<8x16xf32>
    %c0_1 = arith.constant 0 : index
    %c0_2 = arith.constant 0 : index
    %1 = vector.load %arg2[%c0_1, %c0_2] : memref<16x128xf32, #tpu.memory_space<vmem>>, vector<16x128xf32>
    %cst = arith.constant dense<0.000000e+00> : vector<8x128xf32>
    %2 = tpu.matmul %0, %1, %cst {dimension_numbers = #tpu.dot_dimension_numbers<[1], [0], [0], [1], [0, 0, 1, 1], [], []>} : vector<8x16xf32>, vector<16x128xf32>, vector<8x128xf32> -> vector<8x128xf32>
    %c0_3 = arith.constant 0 : index
    %c0_4 = arith.constant 0 : index
    %3 = vector.load %arg3[%c0_3, %c0_4] : memref<1x128xf32, #tpu.memory_space<vmem>>, vector<1x128xf32>
    %4 = vector.broadcast %3 : vector<1x128xf32> to vector<8x128xf32>
    %5 = arith.addf %2, %4 : vector<8x128xf32>
    %6 = math.tanh %5 : vector<8x128xf32>
    %cst_5 = arith.constant 1.000000e+00 : f32
    %7 = vector.broadcast %cst_5 : f32 to vector<8x128xf32>
    %8 = arith.addf %7, %6 : vector<8x128xf32>
    %c0_6 = arith.constant 0 : index
    %c0_7 = arith.constant 0 : index
    %9 = vector.load %arg6[%c0_6, %c0_7] : memref<1x128xf32, #tpu.memory_space<vmem>>, vector<1x128xf32>
    %10 = vector.broadcast %9 : vector<1x128xf32> to vector<8x128xf32>
    %11 = arith.mulf %8, %10 : vector<8x128xf32>
    %c0_8 = arith.constant 0 : index
    %c0_9 = arith.constant 0 : index
    %c0_10 = arith.constant 0 : index
    %12 = vector.load %arg4[%c0_8, %c0_9, %c0_10] : memref<2x128x128xf32, #tpu.memory_space<vmem>>, vector<1x128x128xf32>
    %13 = vector.shape_cast %12 : vector<1x128x128xf32> to vector<128x128xf32>
    %cst_11 = arith.constant dense<0.000000e+00> : vector<8x128xf32>
    %14 = tpu.matmul %5, %13, %cst_11 {dimension_numbers = #tpu.dot_dimension_numbers<[1], [0], [0], [1], [0, 0, 1, 1], [], []>} : vector<8x128xf32>, vector<128x128xf32>, vector<8x128xf32> -> vector<8x128xf32>
    %c0_12 = arith.constant 0 : index
    %c0_13 = arith.constant 0 : index
    %c0_14 = arith.constant 0 : index
    %15 = vector.load %arg5[%c0_12, %c0_13, %c0_14] : memref<2x1x128xf32, #tpu.memory_space<vmem>>, vector<1x1x128xf32>
    %16 = vector.shape_cast %15 : vector<1x1x128xf32> to vector<1x128xf32>
    %17 = vector.broadcast %16 : vector<1x128xf32> to vector<8x128xf32>
    %18 = arith.addf %14, %17 : vector<8x128xf32>
    %19 = math.tanh %18 : vector<8x128xf32>
    %cst_15 = arith.constant 1.000000e+00 : f32
    %20 = vector.broadcast %cst_15 : f32 to vector<8x128xf32>
    %21 = arith.addf %20, %19 : vector<8x128xf32>
    %c0_16 = arith.constant 0 : index
    %c0_17 = arith.constant 0 : index
    %c0_18 = arith.constant 0 : index
    %22 = vector.load %arg7[%c0_16, %c0_17, %c0_18] : memref<2x128x128xf32, #tpu.memory_space<vmem>>, vector<1x128x128xf32>
    %23 = vector.shape_cast %22 : vector<1x128x128xf32> to vector<128x128xf32>
    %cst_19 = arith.constant dense<0.000000e+00> : vector<8x128xf32>
    %24 = tpu.matmul %11, %23, %cst_19 {dimension_numbers = #tpu.dot_dimension_numbers<[1], [0], [0], [1], [0, 0, 1, 1], [], []>} : vector<8x128xf32>, vector<128x128xf32>, vector<8x128xf32> -> vector<8x128xf32>
    %25 = arith.mulf %21, %24 : vector<8x128xf32>
    %c1 = arith.constant 1 : index
    %c0_20 = arith.constant 0 : index
    %c0_21 = arith.constant 0 : index
    %26 = vector.load %arg4[%c1, %c0_20, %c0_21] : memref<2x128x128xf32, #tpu.memory_space<vmem>>, vector<1x128x128xf32>
    %27 = vector.shape_cast %26 : vector<1x128x128xf32> to vector<128x128xf32>
    %cst_22 = arith.constant dense<0.000000e+00> : vector<8x128xf32>
    %28 = tpu.matmul %18, %27, %cst_22 {dimension_numbers = #tpu.dot_dimension_numbers<[1], [0], [0], [1], [0, 0, 1, 1], [], []>} : vector<8x128xf32>, vector<128x128xf32>, vector<8x128xf32> -> vector<8x128xf32>
    %c1_23 = arith.constant 1 : index
    %c0_24 = arith.constant 0 : index
    %c0_25 = arith.constant 0 : index
    %29 = vector.load %arg5[%c1_23, %c0_24, %c0_25] : memref<2x1x128xf32, #tpu.memory_space<vmem>>, vector<1x1x128xf32>
    %30 = vector.shape_cast %29 : vector<1x1x128xf32> to vector<1x128xf32>
    %31 = vector.broadcast %30 : vector<1x128xf32> to vector<8x128xf32>
    %32 = arith.addf %28, %31 : vector<8x128xf32>
    %33 = math.tanh %32 : vector<8x128xf32>
    %cst_26 = arith.constant 1.000000e+00 : f32
    %34 = vector.broadcast %cst_26 : f32 to vector<8x128xf32>
    %35 = arith.addf %34, %33 : vector<8x128xf32>
    %c1_27 = arith.constant 1 : index
    %c0_28 = arith.constant 0 : index
    %c0_29 = arith.constant 0 : index
    %36 = vector.load %arg7[%c1_27, %c0_28, %c0_29] : memref<2x128x128xf32, #tpu.memory_space<vmem>>, vector<1x128x128xf32>
    %37 = vector.shape_cast %36 : vector<1x128x128xf32> to vector<128x128xf32>
    %cst_30 = arith.constant dense<0.000000e+00> : vector<8x128xf32>
    %38 = tpu.matmul %25, %37, %cst_30 {dimension_numbers = #tpu.dot_dimension_numbers<[1], [0], [0], [1], [0, 0, 1, 1], [], []>} : vector<8x128xf32>, vector<128x128xf32>, vector<8x128xf32> -> vector<8x128xf32>
    %39 = arith.mulf %35, %38 : vector<8x128xf32>
    %c0_31 = arith.constant 0 : index
    %c0_32 = arith.constant 0 : index
    %40 = vector.load %arg8[%c0_31, %c0_32] : memref<128x128xf32, #tpu.memory_space<vmem>>, vector<128x128xf32>
    %cst_33 = arith.constant dense<0.000000e+00> : vector<8x128xf32>
    %41 = tpu.matmul %39, %40, %cst_33 {dimension_numbers = #tpu.dot_dimension_numbers<[1], [0], [0], [1], [0, 0, 1, 1], [], []>} : vector<8x128xf32>, vector<128x128xf32>, vector<8x128xf32> -> vector<8x128xf32>
    %c0_34 = arith.constant 0 : index
    %c0_35 = arith.constant 0 : index
    %42 = vector.load %arg9[%c0_34, %c0_35] : memref<1x128xf32, #tpu.memory_space<vmem>>, vector<1x128xf32>
    %43 = vector.broadcast %42 : vector<1x128xf32> to vector<8x128xf32>
    %44 = arith.addf %41, %43 : vector<8x128xf32>
    %45 = math.tanh %44 : vector<8x128xf32>
    %cst_36 = arith.constant 1.000000e+00 : f32
    %46 = vector.broadcast %cst_36 : f32 to vector<8x128xf32>
    %47 = arith.addf %46, %45 : vector<8x128xf32>
    %cst_37 = arith.constant 5.000000e-01 : f32
    %48 = vector.broadcast %cst_37 : f32 to vector<8x128xf32>
    %49 = arith.mulf %48, %47 : vector<8x128xf32>
    %c0_38 = arith.constant 0 : index
    %c0_39 = arith.constant 0 : index
    %50 = vector.load %arg10[%c0_38, %c0_39] : memref<8x128xf32, #tpu.memory_space<vmem>>, vector<8x128xf32>
    tpu.vector_store %arg10[%c0_38, %c0_39], %49 {strides = array<i32>} : memref<8x128xf32, #tpu.memory_space<vmem>>, vector<8x128xf32>,
    return
  }
  func.func @transform_0(%arg0: i32) -> (i32, i32) {
    %c0_i32 = arith.constant 0 : i32
    %c0_i32_0 = arith.constant 0 : i32
    return %arg0, %c0_i32 : i32, i32
  }
  func.func @transform_1(%arg0: i32) -> (i32, i32) {
    %c0_i32 = arith.constant 0 : i32
    %c0_i32_0 = arith.constant 0 : i32
    %c0_i32_1 = arith.constant 0 : i32
    return %c0_i32, %c0_i32_0 : i32, i32
  }
  func.func @transform_2(%arg0: i32) -> (i32, i32) {
    %c0_i32 = arith.constant 0 : i32
    %c0_i32_0 = arith.constant 0 : i32
    %c0_i32_1 = arith.constant 0 : i32
    return %c0_i32, %c0_i32_0 : i32, i32
  }
  func.func @transform_3(%arg0: i32) -> (i32, i32, i32) {
    %c0_i32 = arith.constant 0 : i32
    %c0_i32_0 = arith.constant 0 : i32
    %c0_i32_1 = arith.constant 0 : i32
    %c0_i32_2 = arith.constant 0 : i32
    return %c0_i32, %c0_i32_0, %c0_i32_1 : i32, i32, i32
  }
  func.func @transform_4(%arg0: i32) -> (i32, i32, i32) {
    %c0_i32 = arith.constant 0 : i32
    %c0_i32_0 = arith.constant 0 : i32
    %c0_i32_1 = arith.constant 0 : i32
    %c0_i32_2 = arith.constant 0 : i32
    return %c0_i32, %c0_i32_0, %c0_i32_1 : i32, i32, i32
  }
  func.func @transform_5(%arg0: i32) -> (i32, i32) {
    %c0_i32 = arith.constant 0 : i32
    %c0_i32_0 = arith.constant 0 : i32
    %c0_i32_1 = arith.constant 0 : i32
    return %c0_i32, %c0_i32_0 : i32, i32
  }
  func.func @transform_6(%arg0: i32) -> (i32, i32, i32) {
    %c0_i32 = arith.constant 0 : i32
    %c0_i32_0 = arith.constant 0 : i32
    %c0_i32_1 = arith.constant 0 : i32
    %c0_i32_2 = arith.constant 0 : i32
    return %c0_i32, %c0_i32_0, %c0_i32_1 : i32, i32, i32
  }
  func.func @transform_7(%arg0: i32) -> (i32, i32) {
    %c0_i32 = arith.constant 0 : i32
    %c0_i32_0 = arith.constant 0 : i32
    %c0_i32_1 = arith.constant 0 : i32
    return %c0_i32, %c0_i32_0 : i32, i32
  }
  func.func @transform_8(%arg0: i32) -> (i32, i32) {
    %c0_i32 = arith.constant 0 : i32
    %c0_i32_0 = arith.constant 0 : i32
    %c0_i32_1 = arith.constant 0 : i32
    return %c0_i32, %c0_i32_0 : i32, i32
  }
  func.func @transform_9(%arg0: i32) -> (i32, i32) {
    %c0_i32 = arith.constant 0 : i32
    %c0_i32_0 = arith.constant 0 : i32
    return %arg0, %c0_i32 : i32, i32
  }
}

</mosaic_0001>

<bundles_post_ra>
// kernel: tpu_custom_call.1
= control target key start
LH: loop header
LB: loop body
LE: loop exit
PB: predicated region body
PF: predicated region fallthrough
CT: control target
= control target key end

     0   :  { %14 = vsyncpa [#allocation3], 0  ;;  %s637_s0 = inlined_call_operand.hbm [shape: f32[8,16], index: 0, kind: input, shape index: {}]   ;;  %s638_s1 = inlined_call_operand.hbm [shape: f32[16,128], index: 1, kind: input, shape index: {}]   ;;  %s639_s2 = inlined_call_operand.vmem [shape: f32[1,128], index: 2, kind: input, shape index: {}]   ;;  %s640_s3 = inlined_call_operand.hbm [shape: f32[2,128,128], index: 3, kind: input, shape index: {}]   ;;  %s641_s4 = inlined_call_operand.vmem [shape: f32[2,1,128], index: 4, kind: input, shape index: {}]   ;;  %s642_s5 = inlined_call_operand.vmem [shape: f32[1,128], index: 5, kind: input, shape index: {}]   ;;  %s643_s6 = inlined_call_operand.hbm [shape: f32[2,128,128], index: 6, kind: input, shape index: {}]   ;;  %s644_s7 = inlined_call_operand.hbm [shape: f32[128,128], index: 7, kind: input, shape index: {}]   ;;  %s645_s8 = inlined_call_operand.vmem [shape: f32[1,128], index: 8, kind: input, shape index: {}]   ;;  %s646_s9 = inlined_call_operand.hbm [shape: f32[8,128], index: 9, kind: output, shape index: {}]  }
   0x1   :  { %15 = vsyncpa [#allocation6], 0 }
   0x2   :  { %16 = vsyncpa [#allocation9], 0  ;;  %s33_s11 = sshll.u32 %s638_s1, 4  ;;  %s34_s11 = int_to_ptr.hbm [resolvable:$true] %s33_s11 }
   0x3   :  { %17 = vsyncpa [#allocation4], 0  ;;  %s546_s12 = smov [#allocation5]   ;;  %s65_s16 = sshll.u32 %s643_s6, 4  ;;  %s66_s16 = int_to_ptr.hbm [resolvable:$true] %s65_s16 }
   0x4   :  { %s35_s13 = sshll.u32 %s546_s12, 4  ;;  %s547_s17 = smov 128   ;;  %s36_s13 = int_to_ptr.vmem [resolvable:$true] %s35_s13 }
   0x5   :  { %s548_s18 = smov 8   ;;  %s549_s19 = smov [#allocation8]  }
   0x6   :  { %41 = dma.hbm_to_vmem [thread:$0]  %s34_s11, 256, %s36_s13, [#allocation6], %s547_s17, %s547_s17, %s548_s18  }
   0x7   :  { %s67_s20 = sshll.u32 %s549_s19, 4  ;;  %s23_s23 = sshll.u32 %s637_s0, 4  ;;  %s68_s20 = int_to_ptr.vmem [resolvable:$true] %s67_s20  ;;  %s24_s23 = int_to_ptr.hbm [resolvable:$true] %s23_s23 }
   0x8   :  { %73 = dma.hbm_to_vmem [thread:$0]  %s66_s16, 4096, %s68_s20, [#allocation9], %s547_s17, %s547_s17, %s548_s18  }
   0x9   :  { %s48_s25 = sshll.u32 %s640_s3, 4  ;;  %s550_s26 = smov [#allocation2]   ;;  %s49_s25 = int_to_ptr.hbm [resolvable:$true] %s48_s25 }
   0xa   :  { %s25_s27 = sshll.u32 %s550_s26, 4  ;;  %s551_s6 = smov [#allocation7]   ;;  %s26_s27 = int_to_ptr.vmem [resolvable:$true] %s25_s27 }
   0xb   :  { %28 = dma.hbm_to_vmem [thread:$0]  %s24_s23, 128, %s26_s27, [#allocation3]  }
   0xc   :  { %s50_s28 = sshll.u32 %s551_s6, 4  ;;  %s78_s10 = sshll.u32 %s644_s7, 4  ;;  %s51_s28 = int_to_ptr.vmem [resolvable:$true] %s50_s28  ;;  %s79_s10 = int_to_ptr.hbm [resolvable:$true] %s78_s10 }
   0xd   :  { %56 = dma.hbm_to_vmem [thread:$0]  %s49_s25, 4096, %s51_s28, [#allocation6], %s547_s17, %s547_s17, %s548_s18  }
   0xe   :  { %s552_s0 = smov [#allocation10]  }
   0xf   :  { %s80_s11 = sshll.u32 %s552_s0, 4  ;;  %s81_s11 = int_to_ptr.vmem [resolvable:$true] %s80_s11 }
  0x10   :  { %86 = dma.hbm_to_vmem [thread:$0]  %s79_s10, 2048, %s81_s11, [#allocation9], %s547_s17, %s547_s17, %s548_s18  }
  0x11   :  { %538 = dma.done.wait [#allocation3], 128  }
  0x12   :  { %539 = vsyncadd [#allocation3], 4294967168 }
  0x13   :  { %540 = dma.done.wait [#allocation6], 4352  }
  0x14   :  { %541 = vsyncadd [#allocation6], 4294962944 }
  0x15   :  { %542 = dma.done.wait [#allocation9], 6144  }
  0x16   :  { %543 = vsyncadd [#allocation9], 4294961152  ;;  %v111_v0 = vld [vmem:[#allocation5 + $0x8] sm:$0xff]  ;;  %v110_v1 = vld [vmem:[#allocation5] sm:$0xff]  ;;  %vm116_vm0 = vcmask 130048   ;;  %s553_s18 = smov [#allocation11]  }
  0x17   :  { %134 = vmatpush.msra.mxu0 %v111_v0  ;;  %v109_v2 = vld [vmem:[#allocation2] sm:$0xff]  ;;  %v162_v3 = vld [vmem:[#allocation7 + $0x78] sm:$0xff]  ;;  %v161_v4 = vld [vmem:[#allocation7 + $0x70] sm:$0xff]  ;;  %s357_s19 = sshll.u32 %s553_s18, 4  ;;  %s359_s21 = sshll.u32 %s646_s9, 4  ;;  %s358_s19 = int_to_ptr.vmem [resolvable:$true] %s357_s19  ;;  %s360_s21 = int_to_ptr.hbm [resolvable:$true] %s359_s21 }
  0x18   :  { %167 = vmatpush.msra.mxu1 %v162_v3  ;;  %v160_v5 = vld [vmem:[#allocation7 + $0x68] sm:$0xff]  ;;  %v204_v6 = vld [vmem:[#allocation8 + $0x78] sm:$0xff]  ;;  %v203_v7 = vld [vmem:[#allocation8 + $0x70] sm:$0xff] }
  0x19   :  { %135 = vmatpush.msra.mxu0 %v110_v1  ;;  %v159_v8 = vld [vmem:[#allocation7 + $0x60] sm:$0xff]  ;;  %205 = vmatpush.msra.mxu2 %v204_v6  ;;  %v202_v9 = vld [vmem:[#allocation8 + $0x68] sm:$0xff]  ;;  %v158_v10 = vld [vmem:[#allocation7 + $0x58] sm:$0xff] }
  0x1a   :  { %371 = vmatmul.msk.f32.vlgmr.msra.gmra.mxu0 %vm116_vm0, %v109_v2  ;;  %168 = vmatpush.msra.mxu1 %v161_v4  ;;  %v201_v11 = vld [vmem:[#allocation8 + $0x60] sm:$0xff]  ;;  %v157_v12 = vld [vmem:[#allocation7 + $0x50] sm:$0xff]  ;;  %v200_v13 = vld [vmem:[#allocation8 + $0x58] sm:$0xff] }
  0x1b   :  { %206 = vmatpush.msra.mxu2 %v203_v7  ;;  %v156_v14 = vld [vmem:[#allocation7 + $0x48] sm:$0xff]  ;;  %v199_v15 = vld [vmem:[#allocation8 + $0x50] sm:$0xff]  ;;  %v155_v16 = vld [vmem:[#allocation7 + $0x40] sm:$0xff] }
  0x1c   :  { %169 = vmatpush.msra.mxu1 %v160_v5  ;;  %v198_v17 = vld [vmem:[#allocation8 + $0x48] sm:$0xff]  ;;  %v154_v18 = vld [vmem:[#allocation7 + $0x38] sm:$0xff]  ;;  %v197_v19 = vld [vmem:[#allocation8 + $0x40] sm:$0xff] }
  0x1d   :  { %207 = vmatpush.msra.mxu2 %v202_v9  ;;  %v153_v20 = vld [vmem:[#allocation7 + $0x30] sm:$0xff]  ;;  %v196_v21 = vld [vmem:[#allocation8 + $0x38] sm:$0xff]  ;;  %v152_v22 = vld [vmem:[#allocation7 + $0x28] sm:$0xff] }
  0x1e   :  { %170 = vmatpush.msra.mxu1 %v159_v8  ;;  %v151_v23 = vld [vmem:[#allocation7 + $0x20] sm:$0xff]  ;;  %v150_v24 = vld [vmem:[#allocation7 + $0x18] sm:$0xff]  ;;  %v149_v25 = vld [vmem:[#allocation7 + $0x10] sm:$0xff] }
  0x1f   :  { %208 = vmatpush.msra.mxu2 %v201_v11  ;;  %v148_v26 = vld [vmem:[#allocation7 + $0x8] sm:$0xff]  ;;  %v195_v27 = vld [vmem:[#allocation8 + $0x30] sm:$0xff]  ;;  %v147_v28 = vld [vmem:[#allocation7] sm:$0xff] }
  0x20   :  { %171 = vmatpush.msra.mxu1 %v158_v10  ;;  %v194_v29 = vld [vmem:[#allocation8 + $0x28] sm:$0xff]  ;;  %v193_v30 = vld [vmem:[#allocation8 + $0x20] sm:$0xff]  ;;  %v192_v31 = vld [vmem:[#allocation8 + $0x18] sm:$0xff] }
  0x21   :  { %209 = vmatpush.msra.mxu2 %v200_v13  ;;  %v191_v32 = vld [vmem:[#allocation8 + $0x10] sm:$0xff]  ;;  %v190_v33 = vld [vmem:[#allocation8 + $0x8] sm:$0xff]  ;;  %v189_v34 = vld [vmem:[#allocation8] sm:$0xff] }
  0x22   :  { %172 = vmatpush.msra.mxu1 %v157_v12  ;;  %v242_v35 = vld [vmem:[#allocation7 + $0xf8] sm:$0xff]  ;;  %v241_v36 = vld [vmem:[#allocation7 + $0xf0] sm:$0xff]  ;;  %v240_v37 = vld [vmem:[#allocation7 + $0xe8] sm:$0xff] }
  0x23   :  { %210 = vmatpush.msra.mxu2 %v199_v15  ;;  %248 = vmatpush.msra.mxu3 %v242_v35  ;;  %v286_v38 = vld [vmem:[#allocation8 + $0xf8] sm:$0xff]  ;;  %v285_v39 = vld [vmem:[#allocation8 + $0xf0] sm:$0xff]  ;;  %v239_v40 = vld [vmem:[#allocation7 + $0xe0] sm:$0xff] }
  0x24   :  { %173 = vmatpush.msra.mxu1 %v156_v14  ;;  %287 = vmatpush.msrb.mxu0 %v286_v38  ;;  %v284_v41 = vld [vmem:[#allocation8 + $0xe8] sm:$0xff]  ;;  %v238_v42 = vld [vmem:[#allocation7 + $0xd8] sm:$0xff]  ;;  %v283_v43 = vld [vmem:[#allocation8 + $0xe0] sm:$0xff] }
  0x25   :  { %211 = vmatpush.msra.mxu2 %v198_v17  ;;  %249 = vmatpush.msra.mxu3 %v241_v36  ;;  %v237_v44 = vld [vmem:[#allocation7 + $0xd0] sm:$0xff]  ;;  %v282_v45 = vld [vmem:[#allocation8 + $0xd8] sm:$0xff]  ;;  %v236_v46 = vld [vmem:[#allocation7 + $0xc8] sm:$0xff] }
  0x26   :  { %174 = vmatpush.msra.mxu1 %v155_v16  ;;  %288 = vmatpush.msrb.mxu0 %v285_v39  ;;  %v281_v47 = vld [vmem:[#allocation8 + $0xd0] sm:$0xff]  ;;  %v235_v48 = vld [vmem:[#allocation7 + $0xc0] sm:$0xff]  ;;  %v234_v49 = vld [vmem:[#allocation7 + $0xb8] sm:$0xff] }
  0x27   :  { %212 = vmatpush.msra.mxu2 %v197_v19  ;;  %250 = vmatpush.msra.mxu3 %v240_v37  ;;  %v381_v50 = vld [vmem:[%s639_s2] ss:$0 sm:$0xff]  ;;  %v233_v51 = vld [vmem:[#allocation7 + $0xb0] sm:$0xff]  ;;  %v231_v55 = vld [vmem:[#allocation7 + $0xa0] sm:$0xff] }
  0x28   :  { %175 = vmatpush.msra.mxu1 %v154_v18  ;;  %289 = vmatpush.msrb.mxu0 %v284_v41  ;;  %v232_v53 = vld [vmem:[#allocation7 + $0xa8] sm:$0xff]  ;;  %v230_v56 = vld [vmem:[#allocation7 + $0x98] sm:$0xff]  ;;  %v229_v57 = vld [vmem:[#allocation7 + $0x90] sm:$0xff] }
  0x29   :  { %213 = vmatpush.msra.mxu2 %v196_v21  ;;  %251 = vmatpush.msra.mxu3 %v239_v40  ;;  %v382_v58 = vld [vmem:[%s642_s5] ss:$0 sm:$0xff]  ;;  %v227_v0 = vld [vmem:[#allocation7 + $0x80] sm:$0xff]  ;;  %v278_v2 = vld [vmem:[#allocation8 + $0xb8] sm:$0xff] }
  0x2a   :  { %176 = vmatpush.msra.mxu1 %v153_v20  ;;  %290 = vmatpush.msrb.mxu0 %v283_v43  ;;  %v228_v62 = vld [vmem:[#allocation7 + $0x88] sm:$0xff]  ;;  %v279_v1 = vld [vmem:[#allocation8 + $0xc0] sm:$0xff]  ;;  %v277_v3 = vld [vmem:[#allocation8 + $0xb0] sm:$0xff] }
  0x2b   :  { %214 = vmatpush.msra.mxu2 %v195_v27  ;;  %252 = vmatpush.msra.mxu3 %v238_v42  ;;  %v280_v63 = vld [vmem:[#allocation8 + $0xc8] sm:$0xff]  ;;  %v275_v5 = vld [vmem:[#allocation8 + $0xa0] sm:$0xff]  ;;  %v274_v6 = vld [vmem:[#allocation8 + $0x98] sm:$0xff] }
  0x2c   :  { %177 = vmatpush.msra.mxu1 %v152_v22  ;;  %291 = vmatpush.msrb.mxu0 %v282_v45  ;;  %v276_v4 = vld [vmem:[#allocation8 + $0xa8] sm:$0xff]  ;;  %v273_v7 = vld [vmem:[#allocation8 + $0x90] sm:$0xff]  ;;  %v271_v9 = vld [vmem:[#allocation8 + $0x80] sm:$0xff] }
  0x2d   :  { %215 = vmatpush.msra.mxu2 %v194_v29  ;;  %253 = vmatpush.msra.mxu3 %v237_v44  ;;  %v272_v8 = vld [vmem:[#allocation8 + $0x88] sm:$0xff]  ;;  %v323_v10 = vld [vmem:[#allocation10 + $0x78] sm:$0xff]  ;;  %v322_v11 = vld [vmem:[#allocation10 + $0x70] sm:$0xff] }
  0x2e   :  { %178 = vmatpush.msra.mxu1 %v151_v23  ;;  %292 = vmatpush.msrb.mxu0 %v281_v47  ;;  %v321_v12 = vld [vmem:[#allocation10 + $0x68] sm:$0xff]  ;;  %v320_v13 = vld [vmem:[#allocation10 + $0x60] sm:$0xff]  ;;  %v319_v14 = vld [vmem:[#allocation10 + $0x58] sm:$0xff] }
  0x2f   :  { %216 = vmatpush.msra.mxu2 %v193_v30  ;;  %254 = vmatpush.msra.mxu3 %v236_v46  ;;  %v318_v15 = vld [vmem:[#allocation10 + $0x50] sm:$0xff]  ;;  %v383_v16 = vld [vmem:[%s641_s4] ss:$0 sm:$0xff]  ;;  %v316_v19 = vld [vmem:[#allocation10 + $0x40] sm:$0xff] }
  0x30   :  { %179 = vmatpush.msra.mxu1 %v150_v24  ;;  %293 = vmatpush.msrb.mxu0 %v280_v63  ;;  %v317_v17 = vld [vmem:[#allocation10 + $0x48] sm:$0xff]  ;;  %v315_v21 = vld [vmem:[#allocation10 + $0x38] sm:$0xff]  ;;  %v310_v30 = vld [vmem:[#allocation10 + $0x10] sm:$0xff] }
  0x31   :  { %217 = vmatpush.msra.mxu2 %v192_v31  ;;  %255 = vmatpush.msra.mxu3 %v235_v48  ;;  %v313_v27 = vld [vmem:[#allocation10 + $0x28] sm:$0xff]  ;;  %v311_v29 = vld [vmem:[#allocation10 + $0x18] sm:$0xff] }
  0x32   :  { %180 = vmatpush.msra.mxu1 %v149_v25  ;;  %294 = vmatpush.msrb.mxu0 %v279_v1  ;;  %v309_v31 = vld [vmem:[#allocation10 + $0x8] sm:$0xff] }
  0x33   :  { %218 = vmatpush.msra.mxu2 %v191_v32  ;;  %256 = vmatpush.msra.mxu3 %v234_v49  ;;  %v308_v32 = vld [vmem:[#allocation10] sm:$0xff]  ;;  %v385_v40 = vld [vmem:[%s645_s8] ss:$0 sm:$0xff] }
  0x34   :  { %181 = vmatpush.msra.mxu1 %v148_v26  ;;  %295 = vmatpush.msrb.mxu0 %v278_v2  ;;  %v314_v26 = vld [vmem:[#allocation10 + $0x30] sm:$0xff] }
  0x35   :  { %219 = vmatpush.msra.mxu2 %v190_v33  ;;  %257 = vmatpush.msra.mxu3 %v233_v51  ;;  %v384_v33 = vld [vmem:[%s641_s4 + $0x1] ss:$0 sm:$0xff] }
  0x36   :  { %182 = vmatpush.msra.mxu1 %v147_v28  ;;  %296 = vmatpush.msrb.mxu0 %v277_v3  ;;  %v312_v28 = vld [vmem:[#allocation10 + $0x20] sm:$0xff] }
  0x37   :  { %220 = vmatpush.msra.mxu2 %v189_v34  ;;  %258 = vmatpush.msra.mxu3 %v232_v53 }
  0x38   :  { %297 = vmatpush.msrb.mxu0 %v276_v4  ;;  %328 = vmatpush.msrb.mxu1 %v323_v10 }
  0x39   :  { %259 = vmatpush.msra.mxu3 %v231_v55 }
  0x3a   :  { %298 = vmatpush.msrb.mxu0 %v275_v5  ;;  %329 = vmatpush.msrb.mxu1 %v322_v11 }
  0x3b   :  { %260 = vmatpush.msra.mxu3 %v230_v56 }
  0x3c   :  { %299 = vmatpush.msrb.mxu0 %v274_v6  ;;  %330 = vmatpush.msrb.mxu1 %v321_v12 }
  0x3d   :  { %261 = vmatpush.msra.mxu3 %v229_v57 }
  0x3e   :  { %300 = vmatpush.msrb.mxu0 %v273_v7  ;;  %331 = vmatpush.msrb.mxu1 %v320_v13 }
  0x3f   :  { %262 = vmatpush.msra.mxu3 %v228_v62 }
  0x40   :  { %301 = vmatpush.msrb.mxu0 %v272_v8  ;;  %332 = vmatpush.msrb.mxu1 %v319_v14 }
  0x41   :  { %263 = vmatpush.msra.mxu3 %v227_v0 }
  0x42   :  { %302 = vmatpush.msrb.mxu0 %v271_v9  ;;  %333 = vmatpush.msrb.mxu1 %v318_v15 }
  0x44   :  { %334 = vmatpush.msrb.mxu1 %v317_v17 }
  0x46   :  { %335 = vmatpush.msrb.mxu1 %v316_v19 }
  0x48   :  { %336 = vmatpush.msrb.mxu1 %v315_v21 }
  0x4a   :  { %337 = vmatpush.msrb.mxu1 %v314_v26 }
  0x4c   :  { %338 = vmatpush.msrb.mxu1 %v313_v27 }
  0x4e   :  { %339 = vmatpush.msrb.mxu1 %v312_v28 }
  0x50   :  { %340 = vmatpush.msrb.mxu1 %v311_v29 }
  0x52   :  { %341 = vmatpush.msrb.mxu1 %v310_v30 }
  0x54   :  { %342 = vmatpush.msrb.mxu1 %v309_v31 }
  0x56   :  { %343 = vmatpush.msrb.mxu1 %v308_v32 }
  0x97   :  { %v137_v52 = vpop.f32.mrf.mxu0 }
  0x98   :  { %v138_v54 = vadd.f32 %v381_v50, %v137_v52 }
  0x9a   :  { %386 = vtanh.f32 %v138_v54  ;;  %183 = vmatmul.f32.vlgmr.msra.gmra.mxu1 %v138_v54 }
  0xa0   :  { %v387_v59 = vpop.eup %386 }
  0xa1   :  { %v141_v60 = vadd.f32 1.0, %v387_v59 }
  0xa3   :  { %v146_v61 = vmul.f32 %v382_v58, %v141_v60 }
  0xa5   :  { %221 = vmatmul.f32.vlgmr.msra.gmra.mxu2 %v146_v61 }
 0x117   :  { %v184_v18 = vpop.f32.mrf.mxu1 }
 0x118   :  { %v185_v20 = vadd.f32 %v383_v16, %v184_v18 }
 0x11a   :  { %264 = vmatmul.f32.vlgmr.msra.gmra.mxu3 %v185_v20  ;;  %388 = vtanh.f32 %v185_v20 }
 0x120   :  { %v389_v22 = vpop.eup %388 }
 0x121   :  { %v188_v23 = vadd.f32 1.0, %v389_v22 }
 0x128   :  { %v222_v24 = vpop.f32.mrf.mxu2 }
 0x129   :  { %v225_v25 = vmul.f32 %v222_v24, %v188_v23 }
 0x12b   :  { %303 = vmatmul.f32.vlgmr.msrb.gmra.mxu0 %v225_v25 }
 0x19d   :  { %v265_v34 = vpop.f32.mrf.mxu3 }
 0x19e   :  { %v266_v35 = vadd.f32 %v384_v33, %v265_v34 }
 0x1a0   :  { %390 = vtanh.f32 %v266_v35 }
 0x1a6   :  { %v391_v36 = vpop.eup %390 }
 0x1a7   :  { %v269_v37 = vadd.f32 1.0, %v391_v36 }
 0x1a8   :  { %v304_v38 = vpop.f32.mrf.mxu0 }
 0x1a9   :  { %v307_v39 = vmul.f32 %v304_v38, %v269_v37 }
 0x1ab   :  { %344 = vmatmul.f32.vlgmr.msrb.gmra.mxu1 %v307_v39 }
 0x228   :  { %v345_v41 = vpop.f32.mrf.mxu1 }
 0x229   :  { %v346_v42 = vadd.f32 %v385_v40, %v345_v41 }
 0x22b   :  { %392 = vtanh.f32 %v346_v42 }
 0x231   :  { %v393_v43 = vpop.eup %392 }
 0x232   :  { %v349_v44 = vadd.f32 1.0, %v393_v43 }
 0x234   :  { %v350_v45 = vmul.f32 0.5, %v349_v44 }
 0x236   :  { %351 = vst [vmem:[#allocation11] sm:$0xff] %v350_v45 }
 0x237   :  { %362 = dma.vmem_to_hbm [thread:$0]  %s358_s19, 128, %s360_s21, [#allocation4]  }
 0x238   :  { %544 = dma.done.wait [#allocation4], 128  }
 0x239   :  { %545 = vsyncadd [#allocation4], 4294967168 }
 0x23a   :  { %367 = vsyncpa [#allocation3], 1 }
 0x23b   :  { %368 = vsyncpa [#allocation6], 1 }
 0x23c   :  { %369 = vsyncpa [#allocation9], 1 }
 0x23d   :  { %370 = vsyncpa [#allocation4], 1 }

// kernel: tpu_custom_call.1
= control target key start
LH: loop header
LB: loop body
LE: loop exit
PB: predicated region body
PF: predicated region fallthrough
CT: control target
= control target key end

     0   :  { %14 = vsyncpa [#allocation3], 0  ;;  %s637_s0 = inlined_call_operand.hbm [shape: f32[8,16], index: 0, kind: input, shape index: {}]   ;;  %s638_s1 = inlined_call_operand.hbm [shape: f32[16,128], index: 1, kind: input, shape index: {}]   ;;  %s639_s2 = inlined_call_operand.vmem [shape: f32[1,128], index: 2, kind: input, shape index: {}]   ;;  %s640_s3 = inlined_call_operand.hbm [shape: f32[2,128,128], index: 3, kind: input, shape index: {}]   ;;  %s641_s4 = inlined_call_operand.vmem [shape: f32[2,1,128], index: 4, kind: input, shape index: {}]   ;;  %s642_s5 = inlined_call_operand.vmem [shape: f32[1,128], index: 5, kind: input, shape index: {}]   ;;  %s643_s6 = inlined_call_operand.hbm [shape: f32[2,128,128], index: 6, kind: input, shape index: {}]   ;;  %s644_s7 = inlined_call_operand.hbm [shape: f32[128,128], index: 7, kind: input, shape index: {}]   ;;  %s645_s8 = inlined_call_operand.vmem [shape: f32[1,128], index: 8, kind: input, shape index: {}]   ;;  %s646_s9 = inlined_call_operand.hbm [shape: f32[8,128], index: 9, kind: output, shape index: {}]  }
   0x1   :  { %15 = vsyncpa [#allocation6], 0 }
   0x2   :  { %16 = vsyncpa [#allocation9], 0  ;;  %s33_s11 = sshll.u32 %s638_s1, 4  ;;  %s34_s11 = int_to_ptr.hbm [resolvable:$true] %s33_s11 }
   0x3   :  { %17 = vsyncpa [#allocation4], 0  ;;  %s546_s12 = smov [#allocation5]   ;;  %s65_s16 = sshll.u32 %s643_s6, 4  ;;  %s66_s16 = int_to_ptr.hbm [resolvable:$true] %s65_s16 }
   0x4   :  { %s35_s13 = sshll.u32 %s546_s12, 4  ;;  %s547_s17 = smov 128   ;;  %s36_s13 = int_to_ptr.vmem [resolvable:$true] %s35_s13 }
   0x5   :  { %s548_s18 = smov 8   ;;  %s549_s19 = smov [#allocation8]  }
   0x6   :  { %41 = dma.hbm_to_vmem [thread:$0]  %s34_s11, 256, %s36_s13, [#allocation6], %s547_s17, %s547_s17, %s548_s18  }
   0x7   :  { %s67_s20 = sshll.u32 %s549_s19, 4  ;;  %s23_s23 = sshll.u32 %s637_s0, 4  ;;  %s68_s20 = int_to_ptr.vmem [resolvable:$true] %s67_s20  ;;  %s24_s23 = int_to_ptr.hbm [resolvable:$true] %s23_s23 }
   0x8   :  { %73 = dma.hbm_to_vmem [thread:$0]  %s66_s16, 4096, %s68_s20, [#allocation9], %s547_s17, %s547_s17, %s548_s18  }
   0x9   :  { %s48_s25 = sshll.u32 %s640_s3, 4  ;;  %s550_s26 = smov [#allocation2]   ;;  %s49_s25 = int_to_ptr.hbm [resolvable:$true] %s48_s25 }
   0xa   :  { %s25_s27 = sshll.u32 %s550_s26, 4  ;;  %s551_s6 = smov [#allocation7]   ;;  %s26_s27 = int_to_ptr.vmem [resolvable:$true] %s25_s27 }
   0xb   :  { %28 = dma.hbm_to_vmem [thread:$0]  %s24_s23, 128, %s26_s27, [#allocation3]  }
   0xc   :  { %s50_s28 = sshll.u32 %s551_s6, 4  ;;  %s78_s10 = sshll.u32 %s644_s7, 4  ;;  %s51_s28 = int_to_ptr.vmem [resolvable:$true] %s50_s28  ;;  %s79_s10 = int_to_ptr.hbm [resolvable:$true] %s78_s10 }
   0xd   :  { %56 = dma.hbm_to_vmem [thread:$0]  %s49_s25, 4096, %s51_s28, [#allocation6], %s547_s17, %s547_s17, %s548_s18  }
   0xe   :  { %s552_s0 = smov [#allocation10]  }
   0xf   :  { %s80_s11 = sshll.u32 %s552_s0, 4  ;;  %s81_s11 = int_to_ptr.vmem [resolvable:$true] %s80_s11 }
  0x10   :  { %86 = dma.hbm_to_vmem [thread:$0]  %s79_s10, 2048, %s81_s11, [#allocation9], %s547_s17, %s547_s17, %s548_s18  }
  0x11   :  { %538 = dma.done.wait [#allocation3], 128  }
  0x12   :  { %539 = vsyncadd [#allocation3], 4294967168 }
  0x13   :  { %540 = dma.done.wait [#allocation6], 4352  }
  0x14   :  { %541 = vsyncadd [#allocation6], 4294962944 }
  0x15   :  { %542 = dma.done.wait [#allocation9], 6144  }
  0x16   :  { %543 = vsyncadd [#allocation9], 4294961152  ;;  %v111_v0 = vld [vmem:[#allocation5 + $0x8] sm:$0xff]  ;;  %v110_v1 = vld [vmem:[#allocation5] sm:$0xff]  ;;  %vm116_vm0 = vcmask 130048   ;;  %s553_s18 = smov [#allocation11]  }
  0x17   :  { %134 = vmatpush.msra.mxu0 %v111_v0  ;;  %v109_v2 = vld [vmem:[#allocation2] sm:$0xff]  ;;  %v162_v3 = vld [vmem:[#allocation7 + $0x78] sm:$0xff]  ;;  %v161_v4 = vld [vmem:[#allocation7 + $0x70] sm:$0xff]  ;;  %s357_s19 = sshll.u32 %s553_s18, 4  ;;  %s359_s21 = sshll.u32 %s646_s9, 4  ;;  %s358_s19 = int_to_ptr.vmem [resolvable:$true] %s357_s19  ;;  %s360_s21 = int_to_ptr.hbm [resolvable:$true] %s359_s21 }
  0x18   :  { %167 = vmatpush.msra.mxu1 %v162_v3  ;;  %v160_v5 = vld [vmem:[#allocation7 + $0x68] sm:$0xff]  ;;  %v204_v6 = vld [vmem:[#allocation8 + $0x78] sm:$0xff]  ;;  %v203_v7 = vld [vmem:[#allocation8 + $0x70] sm:$0xff] }
  0x19   :  { %135 = vmatpush.msra.mxu0 %v110_v1  ;;  %v159_v8 = vld [vmem:[#allocation7 + $0x60] sm:$0xff]  ;;  %205 = vmatpush.msra.mxu2 %v204_v6  ;;  %v202_v9 = vld [vmem:[#allocation8 + $0x68] sm:$0xff]  ;;  %v158_v10 = vld [vmem:[#allocation7 + $0x58] sm:$0xff] }
  0x1a   :  { %371 = vmatmul.msk.f32.vlgmr.msra.gmra.mxu0 %vm116_vm0, %v109_v2  ;;  %168 = vmatpush.msra.mxu1 %v161_v4  ;;  %v201_v11 = vld [vmem:[#allocation8 + $0x60] sm:$0xff]  ;;  %v157_v12 = vld [vmem:[#allocation7 + $0x50] sm:$0xff]  ;;  %v200_v13 = vld [vmem:[#allocation8 + $0x58] sm:$0xff] }
  0x1b   :  { %206 = vmatpush.msra.mxu2 %v203_v7  ;;  %v156_v14 = vld [vmem:[#allocation7 + $0x48] sm:$0xff]  ;;  %v199_v15 = vld [vmem:[#allocation8 + $0x50] sm:$0xff]  ;;  %v155_v16 = vld [vmem:[#allocation7 + $0x40] sm:$0xff] }
  0x1c   :  { %169 = vmatpush.msra.mxu1 %v160_v5  ;;  %v198_v17 = vld [vmem:[#allocation8 + $0x48] sm:$0xff]  ;;  %v154_v18 = vld [vmem:[#allocation7 + $0x38] sm:$0xff]  ;;  %v197_v19 = vld [vmem:[#allocation8 + $0x40] sm:$0xff] }
  0x1d   :  { %207 = vmatpush.msra.mxu2 %v202_v9  ;;  %v153_v20 = vld [vmem:[#allocation7 + $0x30] sm:$0xff]  ;;  %v196_v21 = vld [vmem:[#allocation8 + $0x38] sm:$0xff]  ;;  %v152_v22 = vld [vmem:[#allocation7 + $0x28] sm:$0xff] }
  0x1e   :  { %170 = vmatpush.msra.mxu1 %v159_v8  ;;  %v151_v23 = vld [vmem:[#allocation7 + $0x20] sm:$0xff]  ;;  %v150_v24 = vld [vmem:[#allocation7 + $0x18] sm:$0xff]  ;;  %v149_v25 = vld [vmem:[#allocation7 + $0x10] sm:$0xff] }
  0x1f   :  { %208 = vmatpush.msra.mxu2 %v201_v11  ;;  %v148_v26 = vld [vmem:[#allocation7 + $0x8] sm:$0xff]  ;;  %v195_v27 = vld [vmem:[#allocation8 + $0x30] sm:$0xff]  ;;  %v147_v28 = vld [vmem:[#allocation7] sm:$0xff] }
  0x20   :  { %171 = vmatpush.msra.mxu1 %v158_v10  ;;  %v194_v29 = vld [vmem:[#allocation8 + $0x28] sm:$0xff]  ;;  %v193_v30 = vld [vmem:[#allocation8 + $0x20] sm:$0xff]  ;;  %v192_v31 = vld [vmem:[#allocation8 + $0x18] sm:$0xff] }
  0x21   :  { %209 = vmatpush.msra.mxu2 %v200_v13  ;;  %v191_v32 = vld [vmem:[#allocation8 + $0x10] sm:$0xff]  ;;  %v190_v33 = vld [vmem:[#allocation8 + $0x8] sm:$0xff]  ;;  %v189_v34 = vld [vmem:[#allocation8] sm:$0xff] }
  0x22   :  { %172 = vmatpush.msra.mxu1 %v157_v12  ;;  %v242_v35 = vld [vmem:[#allocation7 + $0xf8] sm:$0xff]  ;;  %v241_v36 = vld [vmem:[#allocation7 + $0xf0] sm:$0xff]  ;;  %v240_v37 = vld [vmem:[#allocation7 + $0xe8] sm:$0xff] }
  0x23   :  { %210 = vmatpush.msra.mxu2 %v199_v15  ;;  %248 = vmatpush.msra.mxu3 %v242_v35  ;;  %v286_v38 = vld [vmem:[#allocation8 + $0xf8] sm:$0xff]  ;;  %v285_v39 = vld [vmem:[#allocation8 + $0xf0] sm:$0xff]  ;;  %v239_v40 = vld [vmem:[#allocation7 + $0xe0] sm:$0xff] }
  0x24   :  { %173 = vmatpush.msra.mxu1 %v156_v14  ;;  %287 = vmatpush.msrb.mxu0 %v286_v38  ;;  %v284_v41 = vld [vmem:[#allocation8 + $0xe8] sm:$0xff]  ;;  %v238_v42 = vld [vmem:[#allocation7 + $0xd8] sm:$0xff]  ;;  %v283_v43 = vld [vmem:[#allocation8 + $0xe0] sm:$0xff] }
  0x25   :  { %211 = vmatpush.msra.mxu2 %v198_v17  ;;  %249 = vmatpush.msra.mxu3 %v241_v36  ;;  %v237_v44 = vld [vmem:[#allocation7 + $0xd0] sm:$0xff]  ;;  %v282_v45 = vld [vmem:[#allocation8 + $0xd8] sm:$0xff]  ;;  %v236_v46 = vld [vmem:[#allocation7 + $0xc8] sm:$0xff] }
  0x26   :  { %174 = vmatpush.msra.mxu1 %v155_v16  ;;  %288 = vmatpush.msrb.mxu0 %v285_v39  ;;  %v281_v47 = vld [vmem:[#allocation8 + $0xd0] sm:$0xff]  ;;  %v235_v48 = vld [vmem:[#allocation7 + $0xc0] sm:$0xff]  ;;  %v234_v49 = vld [vmem:[#allocation7 + $0xb8] sm:$0xff] }
  0x27   :  { %212 = vmatpush.msra.mxu2 %v197_v19  ;;  %250 = vmatpush.msra.mxu3 %v240_v37  ;;  %v381_v50 = vld [vmem:[%s639_s2] ss:$0 sm:$0xff]  ;;  %v233_v51 = vld [vmem:[#allocation7 + $0xb0] sm:$0xff]  ;;  %v231_v55 = vld [vmem:[#allocation7 + $0xa0] sm:$0xff] }
  0x28   :  { %175 = vmatpush.msra.mxu1 %v154_v18  ;;  %289 = vmatpush.msrb.mxu0 %v284_v41  ;;  %v232_v53 = vld [vmem:[#allocation7 + $0xa8] sm:$0xff]  ;;  %v230_v56 = vld [vmem:[#allocation7 + $0x98] sm:$0xff]  ;;  %v229_v57 = vld [vmem:[#allocation7 + $0x90] sm:$0xff] }
  0x29   :  { %213 = vmatpush.msra.mxu2 %v196_v21  ;;  %251 = vmatpush.msra.mxu3 %v239_v40  ;;  %v382_v58 = vld [vmem:[%s642_s5] ss:$0 sm:$0xff]  ;;  %v227_v0 = vld [vmem:[#allocation7 + $0x80] sm:$0xff]  ;;  %v278_v2 = vld [vmem:[#allocation8 + $0xb8] sm:$0xff] }
  0x2a   :  { %176 = vmatpush.msra.mxu1 %v153_v20  ;;  %290 = vmatpush.msrb.mxu0 %v283_v43  ;;  %v228_v62 = vld [vmem:[#allocation7 + $0x88] sm:$0xff]  ;;  %v279_v1 = vld [vmem:[#allocation8 + $0xc0] sm:$0xff]  ;;  %v277_v3 = vld [vmem:[#allocation8 + $0xb0] sm:$0xff] }
  0x2b   :  { %214 = vmatpush.msra.mxu2 %v195_v27  ;;  %252 = vmatpush.msra.mxu3 %v238_v42  ;;  %v280_v63 = vld [vmem:[#allocation8 + $0xc8] sm:$0xff]  ;;  %v275_v5 = vld [vmem:[#allocation8 + $0xa0] sm:$0xff]  ;;  %v274_v6 = vld [vmem:[#allocation8 + $0x98] sm:$0xff] }
  0x2c   :  { %177 = vmatpush.msra.mxu1 %v152_v22  ;;  %291 = vmatpush.msrb.mxu0 %v282_v45  ;;  %v276_v4 = vld [vmem:[#allocation8 + $0xa8] sm:$0xff]  ;;  %v273_v7 = vld [vmem:[#allocation8 + $0x90] sm:$0xff]  ;;  %v271_v9 = vld [vmem:[#allocation8 + $0x80] sm:$0xff] }
  0x2d   :  { %215 = vmatpush.msra.mxu2 %v194_v29  ;;  %253 = vmatpush.msra.mxu3 %v237_v44  ;;  %v272_v8 = vld [vmem:[#allocation8 + $0x88] sm:$0xff]  ;;  %v323_v10 = vld [vmem:[#allocation10 + $0x78] sm:$0xff]  ;;  %v322_v11 = vld [vmem:[#allocation10 + $0x70] sm:$0xff] }
  0x2e   :  { %178 = vmatpush.msra.mxu1 %v151_v23  ;;  %292 = vmatpush.msrb.mxu0 %v281_v47  ;;  %v321_v12 = vld [vmem:[#allocation10 + $0x68] sm:$0xff]  ;;  %v320_v13 = vld [vmem:[#allocation10 + $0x60] sm:$0xff]  ;;  %v319_v14 = vld [vmem:[#allocation10 + $0x58] sm:$0xff] }
  0x2f   :  { %216 = vmatpush.msra.mxu2 %v193_v30  ;;  %254 = vmatpush.msra.mxu3 %v236_v46  ;;  %v318_v15 = vld [vmem:[#allocation10 + $0x50] sm:$0xff]  ;;  %v383_v16 = vld [vmem:[%s641_s4] ss:$0 sm:$0xff]  ;;  %v316_v19 = vld [vmem:[#allocation10 + $0x40] sm:$0xff] }
  0x30   :  { %179 = vmatpush.msra.mxu1 %v150_v24  ;;  %293 = vmatpush.msrb.mxu0 %v280_v63  ;;  %v317_v17 = vld [vmem:[#allocation10 + $0x48] sm:$0xff]  ;;  %v315_v21 = vld [vmem:[#allocation10 + $0x38] sm:$0xff]  ;;  %v310_v30 = vld [vmem:[#allocation10 + $0x10] sm:$0xff] }
  0x31   :  { %217 = vmatpush.msra.mxu2 %v192_v31  ;;  %255 = vmatpush.msra.mxu3 %v235_v48  ;;  %v313_v27 = vld [vmem:[#allocation10 + $0x28] sm:$0xff]  ;;  %v311_v29 = vld [vmem:[#allocation10 + $0x18] sm:$0xff] }
  0x32   :  { %180 = vmatpush.msra.mxu1 %v149_v25  ;;  %294 = vmatpush.msrb.mxu0 %v279_v1  ;;  %v309_v31 = vld [vmem:[#allocation10 + $0x8] sm:$0xff] }
  0x33   :  { %218 = vmatpush.msra.mxu2 %v191_v32  ;;  %256 = vmatpush.msra.mxu3 %v234_v49  ;;  %v308_v32 = vld [vmem:[#allocation10] sm:$0xff]  ;;  %v385_v40 = vld [vmem:[%s645_s8] ss:$0 sm:$0xff] }
  0x34   :  { %181 = vmatpush.msra.mxu1 %v148_v26  ;;  %295 = vmatpush.msrb.mxu0 %v278_v2  ;;  %v314_v26 = vld [vmem:[#allocation10 + $0x30] sm:$0xff] }
  0x35   :  { %219 = vmatpush.msra.mxu2 %v190_v33  ;;  %257 = vmatpush.msra.mxu3 %v233_v51  ;;  %v384_v33 = vld [vmem:[%s641_s4 + $0x1] ss:$0 sm:$0xff] }
  0x36   :  { %182 = vmatpush.msra.mxu1 %v147_v28  ;;  %296 = vmatpush.msrb.mxu0 %v277_v3  ;;  %v312_v28 = vld [vmem:[#allocation10 + $0x20] sm:$0xff] }
  0x37   :  { %220 = vmatpush.msra.mxu2 %v189_v34  ;;  %258 = vmatpush.msra.mxu3 %v232_v53 }
  0x38   :  { %297 = vmatpush.msrb.mxu0 %v276_v4  ;;  %328 = vmatpush.msrb.mxu1 %v323_v10 }
  0x39   :  { %259 = vmatpush.msra.mxu3 %v231_v55 }
  0x3a   :  { %298 = vmatpush.msrb.mxu0 %v275_v5  ;;  %329 = vmatpush.msrb.mxu1 %v322_v11 }
  0x3b   :  { %260 = vmatpush.msra.mxu3 %v230_v56 }
  0x3c   :  { %299 = vmatpush.msrb.mxu0 %v274_v6  ;;  %330 = vmatpush.msrb.mxu1 %v321_v12 }
  0x3d   :  { %261 = vmatpush.msra.mxu3 %v229_v57 }
  0x3e   :  { %300 = vmatpush.msrb.mxu0 %v273_v7  ;;  %331 = vmatpush.msrb.mxu1 %v320_v13 }
  0x3f   :  { %262 = vmatpush.msra.mxu3 %v228_v62 }
  0x40   :  { %301 = vmatpush.msrb.mxu0 %v272_v8  ;;  %332 = vmatpush.msrb.mxu1 %v319_v14 }
  0x41   :  { %263 = vmatpush.msra.mxu3 %v227_v0 }
  0x42   :  { %302 = vmatpush.msrb.mxu0 %v271_v9  ;;  %333 = vmatpush.msrb.mxu1 %v318_v15 }
  0x44   :  { %334 = vmatpush.msrb.mxu1 %v317_v17 }
  0x46   :  { %335 = vmatpush.msrb.mxu1 %v316_v19 }
  0x48   :  { %336 = vmatpush.msrb.mxu1 %v315_v21 }
  0x4a   :  { %337 = vmatpush.msrb.mxu1 %v314_v26 }
  0x4c   :  { %338 = vmatpush.msrb.mxu1 %v313_v27 }
  0x4e   :  { %339 = vmatpush.msrb.mxu1 %v312_v28 }
  0x50   :  { %340 = vmatpush.msrb.mxu1 %v311_v29 }
  0x52   :  { %341 = vmatpush.msrb.mxu1 %v310_v30 }
  0x54   :  { %342 = vmatpush.msrb.mxu1 %v309_v31 }
  0x56   :  { %343 = vmatpush.msrb.mxu1 %v308_v32 }
  0x97   :  { %v137_v52 = vpop.f32.mrf.mxu0 }
  0x98   :  { %v138_v54 = vadd.f32 %v381_v50, %v137_v52 }
  0x9a   :  { %386 = vtanh.f32 %v138_v54  ;;  %183 = vmatmul.f32.vlgmr.msra.gmra.mxu1 %v138_v54 }
  0xa0   :  { %v387_v59 = vpop.eup %386 }
  0xa1   :  { %v141_v60 = vadd.f32 1.0, %v387_v59 }
  0xa3   :  { %v146_v61 = vmul.f32 %v382_v58, %v141_v60 }
  0xa5   :  { %221 = vmatmul.f32.vlgmr.msra.gmra.mxu2 %v146_v61 }
 0x117   :  { %v184_v18 = vpop.f32.mrf.mxu1 }
 0x118   :  { %v185_v20 = vadd.f32 %v383_v16, %v184_v18 }
 0x11a   :  { %264 = vmatmul.f32.vlgmr.msra.gmra.mxu3 %v185_v20  ;;  %388 = vtanh.f32 %v185_v20 }
 0x120   :  { %v389_v22 = vpop.eup %388 }
 0x121   :  { %v188_v23 = vadd.f32 1.0, %v389_v22 }
 0x128   :  { %v222_v24 = vpop.f32.mrf.mxu2 }
 0x129   :  { %v225_v25 = vmul.f32 %v222_v24, %v188_v23 }
 0x12b   :  { %303 = vmatmul.f32.vlgmr.msrb.gmra.mxu0 %v225_v25 }
 0x19d   :  { %v265_v34 = vpop.f32.mrf.mxu3 }
 0x19e   :  { %v266_v35 = vadd.f32 %v384_v33, %v265_v34 }
 0x1a0   :  { %390 = vtanh.f32 %v266_v35 }
 0x1a6   :  { %v391_v36 = vpop.eup %390 }
 0x1a7   :  { %v269_v37 = vadd.f32 1.0, %v391_v36 }
 0x1a8   :  { %v304_v38 = vpop.f32.mrf.mxu0 }
 0x1a9   :  { %v307_v39 = vmul.f32 %v304_v38, %v269_v37 }
 0x1ab   :  { %344 = vmatmul.f32.vlgmr.msrb.gmra.mxu1 %v307_v39 }
 0x228   :  { %v345_v41 = vpop.f32.mrf.mxu1 }
 0x229   :  { %v346_v42 = vadd.f32 %v385_v40, %v345_v41 }
 0x22b   :  { %392 = vtanh.f32 %v346_v42 }
 0x231   :  { %v393_v43 = vpop.eup %392 }
 0x232   :  { %v349_v44 = vadd.f32 1.0, %v393_v43 }
 0x234   :  { %v350_v45 = vmul.f32 0.5, %v349_v44 }
 0x236   :  { %351 = vst [vmem:[#allocation11] sm:$0xff] %v350_v45 }
 0x237   :  { %362 = dma.vmem_to_hbm [thread:$0]  %s358_s19, 128, %s360_s21, [#allocation4]  }
 0x238   :  { %544 = dma.done.wait [#allocation4], 128  }
 0x239   :  { %545 = vsyncadd [#allocation4], 4294967168 }
 0x23a   :  { %367 = vsyncpa [#allocation3], 1 }
 0x23b   :  { %368 = vsyncpa [#allocation6], 1 }
 0x23c   :  { %369 = vsyncpa [#allocation9], 1 }
 0x23d   :  { %370 = vsyncpa [#allocation4], 1 }

</bundles_post_ra>
